<compile_context>
chip_gen: v5e
topology: v5e:2x2
jax: 0.10.0
libtpu: 0.0.40
codegen_flags: <defaults>
</compile_context>

<pallas_src>
import functools

import jax
import jax.numpy as jnp
from jax.experimental import pallas as pl
from jax.experimental.pallas import tpu as pltpu


# ----------------------------------------------------------------------------
# Fused kernel:
#   lane 0 of the output row = total loss   (tri [+ ce_cnn + ce_rnn])
#   lane 1 of the output row = precision    (tri prec or max of all three)
# ----------------------------------------------------------------------------
def _deep_loss_kernel(t_ref, x_ref, *rest, n, margin, with_soft):
    if with_soft:
        z_ref, out_ref = rest
    else:
        (out_ref,) = rest

    neg = jnp.float32(-3.0e38)
    pos = jnp.float32(3.0e38)

    t_row = t_ref[...]                        # (1, n) int32, lane-dense
    t_col = t_row.T                           # (n, 1) int32 (tiny XLU relayout)

    # ---- batch-hard triplet (mining on squared distances) ------------------
    x = x_ref[...]                            # (n, d), native dtype
    x32 = x.astype(jnp.float32)
    sq = jnp.sum(x32 * x32, axis=1, keepdims=True)           # (n, 1) f32
    xb = x.astype(jnp.bfloat16)                               # MXU-native
    gram = jax.lax.dot_general(                               # (n, n) f32
        xb, xb, (((1,), (1,)), ((), ())),
        preferred_element_type=jnp.float32)
    dist2 = jnp.maximum(sq + sq.T - 2.0 * gram, 1e-12)        # clamp(., 1e-12)

    same = (t_col == t_row)                                   # (n, n) bool
    # sqrt is monotonic -> mine on dist2, sqrt only the two (n,1) results
    d2_ap = jnp.max(jnp.where(same, dist2, neg), axis=1, keepdims=True)
    d2_an = jnp.min(jnp.where(same, pos, dist2), axis=1, keepdims=True)
    dist_ap = jnp.sqrt(d2_ap)
    dist_an = jnp.sqrt(d2_an)

    loss_tri = jnp.mean(
        jnp.maximum(dist_ap - dist_an + jnp.float32(margin), 0.0))
    prec_tri = jnp.mean((dist_an > dist_ap).astype(jnp.float32))

    loss = loss_tri
    prec = prec_tri

    # ---- CrossEntropy + top-1 on the two stacked aux heads ------------------
    if with_soft:
        z = z_ref[...].astype(jnp.float32)                    # (2n, c)
        t2 = jnp.concatenate([t_col, t_col], axis=0)          # (2n, 1) int32
        col = jax.lax.broadcasted_iota(jnp.int32, z.shape, 1)
        m = jnp.max(z, axis=1, keepdims=True)
        lse = m + jnp.log(jnp.sum(jnp.exp(z - m), axis=1, keepdims=True))
        tgt = jnp.sum(jnp.where(col == t2, z, 0.0), axis=1, keepdims=True)
        nll = lse - tgt                                       # (2n, 1)
        correct = (tgt >= m).astype(jnp.float32)              # (2n, 1)

        inv_n = jnp.float32(1.0 / n)
        rows = jax.lax.broadcasted_iota(jnp.int32, nll.shape, 0)
        head0 = rows < n                                      # cnn rows
        # ce_cnn + ce_rnn = (sum over all 2n rows of nll) / n
        loss = loss_tri + jnp.sum(nll) * inv_n
        prec_cnn = jnp.sum(jnp.where(head0, correct, 0.0)) * inv_n
        prec_rnn = jnp.sum(jnp.where(head0, 0.0, correct)) * inv_n
        prec = jnp.maximum(jnp.maximum(prec_tri, prec_cnn), prec_rnn)

    # ---- pack scalars into one lane-dense (1, 128) row ----------------------
    lane = jax.lax.broadcasted_iota(jnp.int32, (1, 128), 1)
    row = jnp.where(lane == 0, loss, 0.0)
    row = jnp.where(lane == 1, prec, row)
    out_ref[...] = row.astype(jnp.float32)


# ----------------------------------------------------------------------------
# DeepLoss.forward equivalent
# ----------------------------------------------------------------------------
def deep_loss_forward(inputs, targets, epoch, add_soft=0, margin=0.0):
    cnn, rnn, main = inputs
    n, d = main.shape
    c = cnn.shape[1]
    with_soft = bool(epoch >= add_soft)

    # Unpadded inputs: block_shape == full array shape is always legal; Mosaic
    # pads the VMEM tiles internally, so no wrapper-side jnp.pad / in-kernel
    # column masking is needed.
    t_row = targets.astype(jnp.int32).reshape(1, n)           # lane-dense

    in_specs = [
        pl.BlockSpec((1, n), lambda i: (0, 0)),               # targets
        pl.BlockSpec((n, d), lambda i: (0, 0)),               # main embedding
    ]
    args = [t_row, main]

    if with_soft:
        logits = jnp.concatenate([cnn, rnn], axis=0)          # (2n, c)
        args.append(logits)
        in_specs.append(pl.BlockSpec((2 * n, c), lambda i: (0, 0)))

    out = pl.pallas_call(
        functools.partial(_deep_loss_kernel, n=n, margin=float(margin),
                          with_soft=with_soft),
        grid=(1,),
        in_specs=in_specs,
        out_specs=pl.BlockSpec((1, 128), lambda i: (0, 0)),
        out_shape=jax.ShapeDtypeStruct((1, 128), jnp.float32),
        compiler_params=pltpu.CompilerParams(
            dimension_semantics=("arbitrary",)),
    )(*args)

    return out[0, 0], out[0, 1]


if __name__ == "__main__":
    key = jax.random.PRNGKey(0)
    n, d, num_classes = 8, 32, 16

    k1, k2, k3 = jax.random.split(key, 3)
    main = jax.random.normal(k1, (n, d), dtype=jnp.float32)           # embedding
    cnn = jax.random.normal(k2, (n, num_classes), dtype=jnp.float32)  # logits head 1
    rnn = jax.random.normal(k3, (n, num_classes), dtype=jnp.float32)  # logits head 2
    # Deterministic targets with >=2 samples per identity (batch-hard mining)
    targets = jnp.array([0, 0, 1, 1, 2, 2, 3, 3], dtype=jnp.int32)

    # epoch >= add_soft : triplet + both CE heads (fused kernel, full path)
    loss, prec = deep_loss_forward((cnn, rnn, main), targets,
                                   epoch=1, add_soft=0, margin=0.0)
    jax.block_until_ready(loss)
    jax.block_until_ready(prec)

    # epoch < add_soft : triplet-only branch (same kernel, soft heads skipped)
    loss2, prec2 = deep_loss_forward((cnn, rnn, main), targets,
                                     epoch=0, add_soft=1, margin=0.0)
    jax.block_until_ready(loss2)
    jax.block_until_ready(prec2)

    print("KERNEL_OK")
</pallas_src>

<mosaic_0001>
module attributes {stable_mosaic.version = 11 : i64} {
  func.func @_deep_loss_kernel(%arg0: i32, %arg1: memref<1x8xi32, #tpu.memory_space<vmem>>, %arg2: memref<8x32xf32, #tpu.memory_space<vmem>>, %arg3: memref<16x16xf32, #tpu.memory_space<vmem>>, %arg4: memref<1x128xf32, #tpu.memory_space<vmem>>) attributes {dimension_semantics = [#tpu.dimension_semantics<arbitrary>], iteration_bounds = array<i64: 1>, scalar_prefetch = 0 : i64, scratch_operands = 0 : i64, tpu.core_type = #tpu.core_type<tc>, window_params = [{pipeline_mode = #tpu.pipeline_mode<synchronous>, transform_indices = @transform_0, window_bounds = array<i64: 1, 8>}, {pipeline_mode = #tpu.pipeline_mode<synchronous>, transform_indices = @transform_1, window_bounds = array<i64: 8, 32>}, {pipeline_mode = #tpu.pipeline_mode<synchronous>, transform_indices = @transform_2, window_bounds = array<i64: 16, 16>}, {pipeline_mode = #tpu.pipeline_mode<synchronous>, transform_indices = @transform_3, window_bounds = array<i64: 1, 128>}]} {
    %c0 = arith.constant 0 : index
    %c0_0 = arith.constant 0 : index
    %0 = vector.load %arg1[%c0, %c0_0] : memref<1x8xi32, #tpu.memory_space<vmem>>, vector<1x8xi32>
    %1 = tpu.transpose %0, [1, 0] : vector<1x8xi32> -> vector<8x1xi32>
    %c0_1 = arith.constant 0 : index
    %c0_2 = arith.constant 0 : index
    %2 = vector.load %arg2[%c0_1, %c0_2] : memref<8x32xf32, #tpu.memory_space<vmem>>, vector<8x32xf32>
    %3 = arith.mulf %2, %2 : vector<8x32xf32>
    %cst = arith.constant dense<0.000000e+00> : vector<8xf32>
    %4 = vector.multi_reduction <add>, %3, %cst [1] : vector<8x32xf32> to vector<8xf32>
    %5 = vector.shape_cast %4 : vector<8xf32> to vector<8x1xf32>
    %6 = arith.truncf %2 : vector<8x32xf32> to vector<8x32xbf16>
    %cst_3 = arith.constant dense<0.000000e+00> : vector<8x8xf32>
    %7 = tpu.matmul %6, %6, %cst_3 {dimension_numbers = #tpu.dot_dimension_numbers<[1], [1], [0], [0], [0, 0, 1, 0], [], []>} : vector<8x32xbf16>, vector<8x32xbf16>, vector<8x8xf32> -> vector<8x8xf32>
    %8 = tpu.transpose %5, [1, 0] : vector<8x1xf32> -> vector<1x8xf32>
    %9 = vector.broadcast %5 : vector<8x1xf32> to vector<8x8xf32>
    %10 = vector.broadcast %8 : vector<1x8xf32> to vector<8x8xf32>
    %11 = arith.addf %9, %10 : vector<8x8xf32>
    %cst_4 = arith.constant 2.000000e+00 : f32
    %12 = vector.broadcast %cst_4 : f32 to vector<8x8xf32>
    %13 = arith.mulf %12, %7 : vector<8x8xf32>
    %14 = arith.subf %11, %13 : vector<8x8xf32>
    %cst_5 = arith.constant 9.99999996E-13 : f32
    %15 = vector.broadcast %cst_5 : f32 to vector<8x8xf32>
    %16 = arith.maximumf %14, %15 : vector<8x8xf32>
    %17 = vector.broadcast %1 : vector<8x1xi32> to vector<8x8xi32>
    %18 = vector.broadcast %0 : vector<1x8xi32> to vector<8x8xi32>
    %19 = arith.cmpi eq, %17, %18 : vector<8x8xi32>
    %cst_6 = arith.constant -3.000000e+38 : f32
    %20 = vector.broadcast %cst_6 : f32 to vector<8x8xf32>
    %21 = arith.select %19, %16, %20 : vector<8x8xi1>, vector<8x8xf32>
    %cst_7 = arith.constant dense<0xFF800000> : vector<8xf32>
    %22 = vector.multi_reduction <maximumf>, %21, %cst_7 [1] : vector<8x8xf32> to vector<8xf32>
    %23 = vector.shape_cast %22 : vector<8xf32> to vector<8x1xf32>
    %cst_8 = arith.constant 3.000000e+38 : f32
    %24 = vector.broadcast %cst_8 : f32 to vector<8x8xf32>
    %25 = arith.select %19, %24, %16 : vector<8x8xi1>, vector<8x8xf32>
    %cst_9 = arith.constant dense<0x7F800000> : vector<8xf32>
    %26 = vector.multi_reduction <minimumf>, %25, %cst_9 [1] : vector<8x8xf32> to vector<8xf32>
    %27 = vector.shape_cast %26 : vector<8xf32> to vector<8x1xf32>
    %28 = math.sqrt %23 : vector<8x1xf32>
    %29 = math.sqrt %27 : vector<8x1xf32>
    %30 = arith.subf %28, %29 : vector<8x1xf32>
    %cst_10 = arith.constant 0.000000e+00 : f32
    %31 = vector.broadcast %cst_10 : f32 to vector<8x1xf32>
    %32 = arith.addf %30, %31 : vector<8x1xf32>
    %cst_11 = arith.constant 0.000000e+00 : f32
    %33 = vector.broadcast %cst_11 : f32 to vector<8x1xf32>
    %34 = arith.maximumf %32, %33 : vector<8x1xf32>
    %35 = vector.shape_cast %34 : vector<8x1xf32> to vector<1x8x1xf32>
    %cst_12 = arith.constant dense<0.000000e+00> : vector<1xf32>
    %36 = vector.multi_reduction <add>, %35, %cst_12 [1, 2] : vector<1x8x1xf32> to vector<1xf32>
    %37 = vector.shape_cast %36 : vector<1xf32> to vector<1x1x1xf32>
    %38 = vector.extract %37[0, 0, 0] : f32 from vector<1x1x1xf32>
    %cst_13 = arith.constant 8.000000e+00 : f32
    %39 = arith.divf %38, %cst_13 : f32
    %40 = arith.cmpf ogt, %29, %28 : vector<8x1xf32>
    %41 = arith.extui %40 : vector<8x1xi1> to vector<8x1xi32>
    %42 = arith.sitofp %41 : vector<8x1xi32> to vector<8x1xf32>
    %43 = vector.shape_cast %42 : vector<8x1xf32> to vector<1x8x1xf32>
    %cst_14 = arith.constant dense<0.000000e+00> : vector<1xf32>
    %44 = vector.multi_reduction <add>, %43, %cst_14 [1, 2] : vector<1x8x1xf32> to vector<1xf32>
    %45 = vector.shape_cast %44 : vector<1xf32> to vector<1x1x1xf32>
    %46 = vector.extract %45[0, 0, 0] : f32 from vector<1x1x1xf32>
    %cst_15 = arith.constant 8.000000e+00 : f32
    %47 = arith.divf %46, %cst_15 : f32
    %c0_16 = arith.constant 0 : index
    %c0_17 = arith.constant 0 : index
    %48 = vector.load %arg3[%c0_16, %c0_17] : memref<16x16xf32, #tpu.memory_space<vmem>>, vector<16x16xf32>
    %49 = tpu.concatenate %1, %1 in 0 : vector<8x1xi32>, vector<8x1xi32> -> vector<16x1xi32>
    %50 = tpu.iota {dimensions = array<i32: 1>} : vector<16x16xi32>
    %cst_18 = arith.constant dense<0xFF800000> : vector<16xf32>
    %51 = vector.multi_reduction <maximumf>, %48, %cst_18 [1] : vector<16x16xf32> to vector<16xf32>
    %52 = vector.shape_cast %51 : vector<16xf32> to vector<16x1xf32>
    %53 = vector.broadcast %52 : vector<16x1xf32> to vector<16x16xf32>
    %54 = arith.subf %48, %53 : vector<16x16xf32>
    %55 = math.exp %54 : vector<16x16xf32>
    %cst_19 = arith.constant dense<0.000000e+00> : vector<16xf32>
    %56 = vector.multi_reduction <add>, %55, %cst_19 [1] : vector<16x16xf32> to vector<16xf32>
    %57 = vector.shape_cast %56 : vector<16xf32> to vector<16x1xf32>
    %58 = math.log %57 : vector<16x1xf32>
    %59 = arith.addf %52, %58 : vector<16x1xf32>
    %60 = vector.broadcast %49 : vector<16x1xi32> to vector<16x16xi32>
    %61 = arith.cmpi eq, %50, %60 : vector<16x16xi32>
    %cst_20 = arith.constant 0.000000e+00 : f32
    %62 = vector.broadcast %cst_20 : f32 to vector<16x16xf32>
    %63 = arith.select %61, %48, %62 : vector<16x16xi1>, vector<16x16xf32>
    %cst_21 = arith.constant dense<0.000000e+00> : vector<16xf32>
    %64 = vector.multi_reduction <add>, %63, %cst_21 [1] : vector<16x16xf32> to vector<16xf32>
    %65 = vector.shape_cast %64 : vector<16xf32> to vector<16x1xf32>
    %66 = arith.subf %59, %65 : vector<16x1xf32>
    %67 = arith.cmpf oge, %65, %52 : vector<16x1xf32>
    %68 = arith.extui %67 : vector<16x1xi1> to vector<16x1xi32>
    %69 = arith.sitofp %68 : vector<16x1xi32> to vector<16x1xf32>
    %70 = tpu.iota {dimensions = array<i32: 0>} : vector<16x1xi32>
    %c8_i32 = arith.constant 8 : i32
    %71 = vector.broadcast %c8_i32 : i32 to vector<16x1xi32>
    %72 = arith.cmpi slt, %70, %71 : vector<16x1xi32>
    %73 = vector.shape_cast %66 : vector<16x1xf32> to vector<1x16x1xf32>
    %cst_22 = arith.constant dense<0.000000e+00> : vector<1xf32>
    %74 = vector.multi_reduction <add>, %73, %cst_22 [1, 2] : vector<1x16x1xf32> to vector<1xf32>
    %75 = vector.shape_cast %74 : vector<1xf32> to vector<1x1x1xf32>
    %76 = vector.extract %75[0, 0, 0] : f32 from vector<1x1x1xf32>
    %cst_23 = arith.constant 1.250000e-01 : f32
    %77 = arith.mulf %76, %cst_23 : f32
    %78 = arith.addf %39, %77 : f32
    %cst_24 = arith.constant 0.000000e+00 : f32
    %79 = vector.broadcast %cst_24 : f32 to vector<16x1xf32>
    %80 = arith.select %72, %69, %79 : vector<16x1xi1>, vector<16x1xf32>
    %81 = vector.shape_cast %80 : vector<16x1xf32> to vector<1x16x1xf32>
    %cst_25 = arith.constant dense<0.000000e+00> : vector<1xf32>
    %82 = vector.multi_reduction <add>, %81, %cst_25 [1, 2] : vector<1x16x1xf32> to vector<1xf32>
    %83 = vector.shape_cast %82 : vector<1xf32> to vector<1x1x1xf32>
    %84 = vector.extract %83[0, 0, 0] : f32 from vector<1x1x1xf32>
    %cst_26 = arith.constant 1.250000e-01 : f32
    %85 = arith.mulf %84, %cst_26 : f32
    %cst_27 = arith.constant 0.000000e+00 : f32
    %86 = vector.broadcast %cst_27 : f32 to vector<16x1xf32>
    %87 = arith.select %72, %86, %69 : vector<16x1xi1>, vector<16x1xf32>
    %88 = vector.shape_cast %87 : vector<16x1xf32> to vector<1x16x1xf32>
    %cst_28 = arith.constant dense<0.000000e+00> : vector<1xf32>
    %89 = vector.multi_reduction <add>, %88, %cst_28 [1, 2] : vector<1x16x1xf32> to vector<1xf32>
    %90 = vector.shape_cast %89 : vector<1xf32> to vector<1x1x1xf32>
    %91 = vector.extract %90[0, 0, 0] : f32 from vector<1x1x1xf32>
    %cst_29 = arith.constant 1.250000e-01 : f32
    %92 = arith.mulf %91, %cst_29 : f32
    %93 = arith.maximumf %47, %85 : f32
    %94 = arith.maximumf %93, %92 : f32
    %95 = tpu.iota {dimensions = array<i32: 1>} : vector<1x128xi32>
    %c0_i32 = arith.constant 0 : i32
    %96 = vector.broadcast %c0_i32 : i32 to vector<1x128xi32>
    %97 = arith.cmpi eq, %95, %96 : vector<1x128xi32>
    %cst_30 = arith.constant 0.000000e+00 : f32
    %98 = vector.broadcast %78 : f32 to vector<1x128xf32>
    %99 = vector.broadcast %cst_30 : f32 to vector<1x128xf32>
    %100 = arith.select %97, %98, %99 : vector<1x128xi1>, vector<1x128xf32>
    %c1_i32 = arith.constant 1 : i32
    %101 = vector.broadcast %c1_i32 : i32 to vector<1x128xi32>
    %102 = arith.cmpi eq, %95, %101 : vector<1x128xi32>
    %103 = vector.broadcast %94 : f32 to vector<1x128xf32>
    %104 = arith.select %102, %103, %100 : vector<1x128xi1>, vector<1x128xf32>
    %c0_31 = arith.constant 0 : index
    %c0_32 = arith.constant 0 : index
    %105 = vector.load %arg4[%c0_31, %c0_32] : memref<1x128xf32, #tpu.memory_space<vmem>>, vector<1x128xf32>
    tpu.vector_store %arg4[%c0_31, %c0_32], %104 {strides = array<i32>} : memref<1x128xf32, #tpu.memory_space<vmem>>, vector<1x128xf32>,
    return
  }
  func.func @transform_0(%arg0: i32) -> (i32, i32) {
    %c0_i32 = arith.constant 0 : i32
    %c0_i32_0 = arith.constant 0 : i32
    %c0_i32_1 = arith.constant 0 : i32
    return %c0_i32, %c0_i32_0 : i32, i32
  }
  func.func @transform_1(%arg0: i32) -> (i32, i32) {
    %c0_i32 = arith.constant 0 : i32
    %c0_i32_0 = arith.constant 0 : i32
    %c0_i32_1 = arith.constant 0 : i32
    return %c0_i32, %c0_i32_0 : i32, i32
  }
  func.func @transform_2(%arg0: i32) -> (i32, i32) {
    %c0_i32 = arith.constant 0 : i32
    %c0_i32_0 = arith.constant 0 : i32
    %c0_i32_1 = arith.constant 0 : i32
    return %c0_i32, %c0_i32_0 : i32, i32
  }
  func.func @transform_3(%arg0: i32) -> (i32, i32) {
    %c0_i32 = arith.constant 0 : i32
    %c0_i32_0 = arith.constant 0 : i32
    %c0_i32_1 = arith.constant 0 : i32
    return %c0_i32, %c0_i32_0 : i32, i32
  }
}

</mosaic_0001>

<bundles_post_ra>
// kernel: tpu_custom_call.1
= control target key start
LH: loop header
LB: loop body
LE: loop exit
PB: predicated region body
PF: predicated region fallthrough
CT: control target
= control target key end

     0   :  { %8 = vsyncpa [#allocation3], 0  ;;  %s564_s0 = inlined_call_operand.hbm [shape: s32[1,8], index: 0, kind: input, shape index: {}]   ;;  %s565_s1 = inlined_call_operand.hbm [shape: f32[8,32], index: 1, kind: input, shape index: {}]   ;;  %s566_s2 = inlined_call_operand.hbm [shape: f32[16,16], index: 2, kind: input, shape index: {}]   ;;  %s567_s3 = inlined_call_operand.hbm [shape: f32[1,128], index: 3, kind: output, shape index: {}]  }
   0x1   :  { %9 = vsyncpa [#allocation6], 0  ;;  %s27_s14 = sshll.u32 %s565_s1, 4  ;;  %s28_s14 = int_to_ptr.hbm [resolvable:$true] %s27_s14 }
   0x2   :  { %10 = vsyncpa [#allocation4], 0  ;;  %s501_s15 = smov [#allocation5]   ;;  %s16_s19 = sshll.u32 %s564_s0, 4  ;;  %s17_s19 = int_to_ptr.hbm [resolvable:$true] %s16_s19 }
   0x3   :  { %s29_s16 = sshll.u32 %s501_s15, 4  ;;  %s502_s20 = smov [#allocation2]   ;;  %s30_s16 = int_to_ptr.vmem [resolvable:$true] %s29_s16 }
   0x4   :  { %32 = dma.hbm_to_vmem [thread:$0]  %s28_s14, 128, %s30_s16, [#allocation6]  }
   0x5   :  { %s18_s21 = sshll.u32 %s502_s20, 4  ;;  %s37_s24 = sshll.u32 %s566_s2, 4  ;;  %s19_s21 = int_to_ptr.vmem [resolvable:$true] %s18_s21  ;;  %s38_s24 = int_to_ptr.hbm [resolvable:$true] %s37_s24 }
   0x6   :  { %21 = dma.hbm_to_vmem [thread:$0]  %s17_s19, 16, %s19_s21, [#allocation3]  }
   0x7   :  { %s503_s1 = smov [#allocation7]   ;;  %s504_s26 = smov 128  }
   0x8   :  { %s39_s25 = sshll.u32 %s503_s1, 4  ;;  %s505_s27 = smov 8   ;;  %s40_s25 = int_to_ptr.vmem [resolvable:$true] %s39_s25 }
   0x9   :  { %45 = dma.hbm_to_vmem [thread:$0]  %s38_s24, 256, %s40_s25, [#allocation6], %s504_s26, %s504_s26, %s505_s27  }
   0xa   :  { %495 = dma.done.wait [#allocation3], 16  }
   0xb   :  { %496 = vsyncadd [#allocation3], 4294967280 }
   0xc   :  { %497 = dma.done.wait [#allocation6], 384  }
   0xd   :  { %498 = vsyncadd [#allocation6], 4294966912  ;;  %v92_v0 = vld [vmem:[#allocation5] sm:$0xff]  ;;  %vm94_vm0 = vcmask 261120   ;;  %v236_v3 = vld [vmem:[#allocation7 + $0x8] sm:$0xff]  ;;  %vm239_vm1 = vcmask 130048   ;;  %v237_v35 = vlaneseq }
   0xe   :  { %v93_v1 = vmul.f32 %v92_v0, %v92_v0  ;;  %v243_v4 = vsel %vm239_vm1, %v236_v3, -inf  ;;  %v59_v5 = vld [vmem:[#allocation2] sm:$0x1]  ;;  %v98_v6 = vpack.c.bf16 %v92_v0, %v92_v0  ;;  %v506_v7 = vmov 0   ;;  %v235_v12 = vld [vmem:[#allocation7] sm:$0xff]  ;;  %s346_s12 = sshll.u32 %s567_s3, 4  ;;  %s347_s12 = int_to_ptr.hbm [resolvable:$true] %s346_s12 }
   0xf   :  { %244 = vmax.xlane.f32.xlu2 %v243_v4  ;;  %382 = vset.pattern.permute.xlu1 %v506_v7  ;;  %v240_v13 = vsel %vm239_vm1, %v235_v12, -inf  ;;  %v384_v21 = vld [vmem:[#allocation2] ss:$0 sm:$0xff]  ;;  %vm158_vm2 = vcmask 64512   ;;  %v545_v37 = vand.u32 127, %v237_v35  ;;  %vm193_vm6 = vcmask 7168  }
  0x10   :  { %v95_v2 = vsel %vm94_vm0, %v93_v1, 0.0  ;;  %v100_v8 = vsel %vm94_vm0, %v98_v6, 0  ;;  %v507_v63 = vmov 0.0   ;;  %s509_s14 = smov [#allocation8]  }
  0x11   :  { %96 = vadd.xlane.f32.xlu0 %v95_v2  ;;  %109 = vmatpush.bf16.xpose.msra.mxu0 %v100_v8  ;;  %vm332_vm14 = vcmp.eq.s32.totalorder %v545_v37, 0  ;;  %s344_s15 = sshll.u32 %s509_s14, 4  ;;  %vm335_vm15 = vcmp.eq.s32.totalorder %v545_v37, 1  ;;  %s345_s15 = int_to_ptr.vmem [resolvable:$true] %s344_s15 }
  0x18   :  { %357 = vmatmul.msk.bf16.vlgmr.msra.gmra.mxu0 %vm94_vm0, %v98_v6 }
  0x3a   :  { %60 = vxpose.xlu0.b32.start.end [1/1] (short) (narrow) %v59_v5, 8 }
  0x82   :  { %v541_v15 = vpop.xlane.xlu2 %244 }
  0x83   :  { %v247_v30 = vsub.f32 %v236_v3, %v541_v15 }
  0x84   :  { %v97_v9 = vpop.xlane.xlu0 %96 }
  0x85   :  { %115 = vxpose.xlu2.b32.start.end [1/1] (short) (narrow) %v97_v9, 8  ;;  %v250_v32 = vmul.f32 1.442695, %v247_v30 }
  0x95   :  { %v111_v11 = vpop.f32.mrf.mxu0 }
  0x96   :  { %v149_v19 = vmul.f32 2.0, %v111_v11 }
  0x9d   :  { %v113_v14 = vpop.f32.mrf.mxu0 }
  0xa1   :  { %383 = vset.pattern.permute.xlu0 %v506_v7 }
  0xde   :  { %v76_v10 = vpop.trf.xlu0 }
  0xdf   :  { %153 = vperm.xlu1 %382, %v76_v10  }
 0x109   :  { %241 = vmax.xlane.f32.xlu1 %v240_v13 }
 0x11e   :  { %v131_v16 = vpop.trf.xlu2 }
 0x11f   :  { %v147_v17 = vperm.slane %v131_v16, 0 }
 0x121   :  { %v148_v18 = vadd.f32 %v147_v17, %v97_v9 }
 0x123   :  { %v150_v20 = vsub.f32 %v148_v18, %v149_v19 }
 0x125   :  { %v151_v22 = vmax.f32 %v150_v20, 1e-12 }
 0x151   :  { %v154_v23 = vpop.permute.xlu1 %153 }
 0x152   :  { %vm156_vm3 = vcmp.eq.s32.totalorder %v154_v23, %v384_v21  ;;  %vm264_vm4 = vcmp.eq.s32.totalorder %v545_v37, %v154_v23 }
 0x153   :  { %v162_v24 = vsel %vm156_vm3, 3e+38, %v151_v22  ;;  %v157_v25 = vsel %vm156_vm3, %v151_v22, -3e+38  ;;  %v265_v39 = vsel %vm264_vm4, %v235_v12, 0.0  ;;  %v266_v41 = vsel %vm264_vm4, %v236_v3, 0.0 }
 0x154   :  { %v163_v26 = vsel %vm158_vm2, %v162_v24, inf  ;;  %v159_v27 = vsel %vm158_vm2, %v157_v25, -inf  ;;  %v267_v40 = vsel %vm239_vm1, %v265_v39, 0.0  ;;  %v270_v42 = vsel %vm239_vm1, %v266_v41, 0.0 }
 0x155   :  { %164 = vmin.xlane.f32.xlu2 %v163_v26  ;;  %160 = vmax.xlane.f32.xlu0 %v159_v27 }
 0x17c   :  { %v242_v28 = vpop.xlane.xlu1 %241 }
 0x17d   :  { %v246_v29 = vsub.f32 %v235_v12, %v242_v28 }
 0x17f   :  { %v248_v31 = vmul.f32 1.442695, %v246_v29  ;;  %v508_v29 = vmov 8.0  }
 0x181   :  { %385 = vpow2.f32 %v248_v31 }
 0x182   :  { %387 = vpow2.f32 %v250_v32 }
 0x187   :  { %v386_v33 = vpop.eup %385 }
 0x188   :  { %v252_v34 = vsel %vm239_vm1, %v386_v33, 0.0  ;;  %v388_v36 = vpop.eup %387 }
 0x189   :  { %253 = vadd.xlane.f32.xlu1 %v252_v34  ;;  %v255_v38 = vsel %vm239_vm1, %v388_v36, 0.0 }
 0x191   :  { %256 = vadd.xlane.f32.xlu1 %v255_v38 }
 0x199   :  { %268 = vadd.xlane.f32.xlu1 %v267_v40 }
 0x1a1   :  { %271 = vadd.xlane.f32.xlu1 %v270_v42 }
 0x1c8   :  { %v165_v43 = vpop.xlane.xlu2 %164  ;;  %v161_v44 = vpop.xlane.xlu0 %160 }
 0x1c9   :  { %389 = vrsqrt.f32 %v165_v43  ;;  %vm173_vm7 = vcmp.eq.f32.partialorder %v161_v44, inf  ;;  %vm185_vm8 = vcmp.eq.f32.partialorder %v165_v43, inf  ;;  %v176_v12 = vand.u32 2147483648, %v161_v44 }
 0x1ca   :  { %391 = vrsqrt.f32 %v161_v44  ;;  %v188_v13 = vand.u32 2147483648, %v165_v43  ;;  %vm175_vm9 = vcmp.eq.f32.partialorder %v161_v44, 0.0  ;;  %vm187_vm10 = vcmp.eq.f32.partialorder %v165_v43, 0.0 }
 0x1cf   :  { %v390_v45 = vpop.eup %389 }
 0x1d0   :  { %v392_v46 = vpop.eup %391  ;;  %v179_v48 = vmul.f32 %v390_v45, %v165_v43 }
 0x1d1   :  { %v167_v49 = vmul.f32 %v392_v46, %v161_v44 }
 0x1d2   :  { %v180_v50 = vmul.f32 %v390_v45, %v179_v48 }
 0x1d3   :  { %v168_v51 = vmul.f32 %v392_v46, %v167_v49 }
 0x1d4   :  { %v181_v53 = vmul.f32 0.5, %v180_v50 }
 0x1d5   :  { %v169_v54 = vmul.f32 0.5, %v168_v51 }
 0x1d6   :  { %v182_v56 = vsub.f32 1.5, %v181_v53 }
 0x1d7   :  { %v170_v55 = vsub.f32 1.5, %v169_v54 }
 0x1d8   :  { %v183_v62 = vmul.f32 %v390_v45, %v182_v56 }
 0x1d9   :  { %v171_v61 = vmul.f32 %v392_v46, %v170_v55 }
 0x1da   :  { %v184_v5 = vmul.f32 %v183_v62, %v165_v43 }
 0x1db   :  { %v172_v4 = vmul.f32 %v171_v61, %v161_v44 }
 0x1dc   :  { %v186_v11 = vsel %vm185_vm8, %v165_v43, %v184_v5 }
 0x1dd   :  { %v174_v10 = vsel %vm173_vm7, %v161_v44, %v172_v4  ;;  %v189_v19 = vsel %vm187_vm10, %v188_v13, %v186_v11 }
 0x1de   :  { %v177_v18 = vsel %vm175_vm9, %v176_v12, %v174_v10 }
 0x1df   :  { %vm213_vm11 = vcmp.gt.f32.partialorder %v189_v19, %v177_v18  ;;  %v190_v22 = vsub.f32 %v177_v18, %v189_v19 }
 0x1e0   :  { %v358_v20 = vsel %vm213_vm11, 1.0, %v507_v63 }
 0x1e1   :  { %v216_v21 = vsel %vm193_vm6, %v358_v20, 0.0  ;;  %v192_v23 = vmax.f32 %v190_v22, 0.0 }
 0x1e3   :  { %v194_v24 = vsel %vm193_vm6, %v192_v23, 0.0 }
 0x1fc   :  { %v254_v47 = vpop.xlane.xlu1 %253 }
 0x1fd   :  { %393 = vlog2.f32 %v254_v47 }
 0x203   :  { %v394_v57 = vpop.eup %393 }
 0x204   :  { %v257_v52 = vpop.xlane.xlu1 %256  ;;  %v259_v60 = vmul.f32 0.6931472, %v394_v57 }
 0x205   :  { %395 = vlog2.f32 %v257_v52 }
 0x206   :  { %v262_v3 = vadd.f32 %v259_v60, %v242_v28  ;;  %397 = vrcp.f32 %v508_v29 }
 0x20b   :  { %v396_v58 = vpop.eup %395 }
 0x20c   :  { %v269_v59 = vpop.xlane.xlu1 %268  ;;  %v261_v1 = vmul.f32 0.6931472, %v396_v58  ;;  %v398_v30 = vpop.eup %397 }
 0x20d   :  { %vm275_vm5 = vcmp.ge.f32.partialorder %v269_v59, %v242_v28  ;;  %v273_v6 = vsub.f32 %v262_v3, %v269_v59  ;;  %v205_v35 = vmul.f32 8.0, %v398_v30  ;;  %vm209_vm13 = vweird.f32 %v398_v30 }
 0x20e   :  { %v359_v0 = vsel %vm275_vm5, 1.0, %v507_v63  ;;  %v263_v7 = vadd.f32 %v261_v1, %v541_v15 }
 0x20f   :  { %v302_v2 = vsel %vm193_vm6, %v359_v0, 0.0  ;;  %v286_v14 = vsel %vm193_vm6, %v273_v6, 0.0  ;;  %v206_v40 = vsub.f32 1.0, %v205_v35 }
 0x210   :  { %305 = vadd.xlane.f32.xlu1 %v302_v2 }
 0x211   :  { %v207_v46 = vmul.f32 %v398_v30, %v206_v40 }
 0x213   :  { %v208_v51 = vadd.f32 %v398_v30, %v207_v46 }
 0x214   :  { %v272_v8 = vpop.xlane.xlu1 %271 }
 0x215   :  { %v274_v9 = vsub.f32 %v263_v7, %v272_v8  ;;  %vm276_vm12 = vcmp.ge.f32.partialorder %v272_v8, %v541_v15  ;;  %v210_v60 = vsel %vm209_vm13, %v398_v30, %v208_v51 }
 0x216   :  { %v360_v25 = vsel %vm276_vm12, 1.0, %v507_v63 }
 0x217   :  { %v287_v16 = vsel %vm193_vm6, %v274_v9, 0.0  ;;  %v318_v26 = vsel %vm193_vm6, %v360_v25, 0.0 }
 0x218   :  { %v288_v17 = vadd.f32 %v287_v16, %v286_v14 }
 0x21a   :  { %289 = vadd.xlane.f32.xlu1 %v288_v17 }
 0x222   :  { %217 = vadd.xlane.f32.xlu1 %v216_v21 }
 0x22a   :  { %195 = vadd.xlane.f32.xlu1 %v194_v24 }
 0x232   :  { %320 = vadd.xlane.f32.xlu1 %v318_v26 }
 0x283   :  { %v306_v27 = vpop.xlane.xlu1 %305 }
 0x284   :  { %v307_v34 = vrot.slane %v306_v27, 4 }
 0x286   :  { %v308_v39 = vadd.f32 %v307_v34, %v306_v27 }
 0x288   :  { %v309_v44 = vrot.slane %v308_v39, 2 }
 0x28a   :  { %v310_v52 = vadd.f32 %v309_v44, %v308_v39 }
 0x28c   :  { %v311_v61 = vrot.slane %v310_v52, 1 }
 0x28d   :  { %v290_v28 = vpop.xlane.xlu1 %289 }
 0x28e   :  { %v291_v33 = vrot.slane %v290_v28, 4  ;;  %v312_v2 = vadd.f32 %v311_v61, %v310_v52 }
 0x290   :  { %v292_v38 = vadd.f32 %v291_v33, %v290_v28 }
 0x292   :  { %v293_v43 = vrot.slane %v292_v38, 2 }
 0x294   :  { %v294_v49 = vadd.f32 %v293_v43, %v292_v38 }
 0x295   :  { %v218_v31 = vpop.xlane.xlu1 %217 }
 0x296   :  { %v219_v32 = vrot.slane %v218_v31, 4  ;;  %v295_v57 = vrot.slane %v294_v49, 1 }
 0x298   :  { %v220_v36 = vadd.f32 %v219_v32, %v218_v31  ;;  %v296_v0 = vadd.f32 %v295_v57, %v294_v49 }
 0x29a   :  { %v221_v15 = vrot.slane %v220_v36, 2 }
 0x29c   :  { %v222_v48 = vadd.f32 %v221_v15, %v220_v36 }
 0x29d   :  { %v196_v41 = vpop.xlane.xlu1 %195 }
 0x29e   :  { %v197_v42 = vrot.slane %v196_v41, 4  ;;  %v223_v56 = vrot.slane %v222_v48, 1 }
 0x2a0   :  { %v198_v45 = vadd.f32 %v197_v42, %v196_v41  ;;  %v224_v63 = vadd.f32 %v223_v56, %v222_v48 }
 0x2a2   :  { %v199_v47 = vrot.slane %v198_v45, 2 }
 0x2a4   :  { %v200_v50 = vadd.f32 %v199_v47, %v198_v45 }
 0x2a5   :  { %v321_v53 = vpop.xlane.xlu1 %320 }
 0x2a6   :  { %v322_v54 = vrot.slane %v321_v53, 4  ;;  %v201_v55 = vrot.slane %v200_v50, 1 }
 0x2a8   :  { %v323_v58 = vadd.f32 %v322_v54, %v321_v53  ;;  %v202_v59 = vadd.f32 %v201_v55, %v200_v50 }
 0x2aa   :  { %v324_v62 = vrot.slane %v323_v58, 2  ;;  %361 = vpush %v202_v59 }
 0x2ab   :  { %363 = vpush %v210_v60 }
 0x2ac   :  { %v325_v1 = vadd.f32 %v324_v62, %v323_v58  ;;  %365 = vpush %v224_v63 }
 0x2ad   :  { %367 = vpush %v296_v0 }
 0x2ae   :  { %369 = vpush %v312_v2  ;;  %v326_v3 = vrot.slane %v325_v1, 1 }
 0x2b0   :  { %v327_v4 = vadd.f32 %v326_v3, %v325_v1 }
 0x2b2   :  { %371 = vpush %v327_v4 }
 0x2db   :  { %s362_s0 = spop %361 }
 0x2dc   :  { %s364_s2 = spop %363 }
 0x2dd   :  { %s212_s28 = smul.f32 %s364_s2, %s362_s0  ;;  %s366_s29 = spop %365 }
 0x2de   :  { %s368_s30 = spop %367  ;;  %s234_s6 = smul.f32 %s366_s29, %s364_s2 }
 0x2df   :  { %s298_s4 = smul.f32 0.125, %s368_s30  ;;  %s370_s5 = spop %369 }
 0x2e0   :  { %s314_s8 = smul.f32 0.125, %s370_s5 }
 0x2e1   :  { %s299_s7 = sadd.f32 %s298_s4, %s212_s28 }
 0x2e2   :  { %s330_s16 = smax.f32 %s314_s8, %s234_s6 }
 0x2e3   :  { %s372_s9 = spop %371  ;;  %v333_v5 = vstv %s299_s7 }
 0x2e4   :  { %s329_s13 = smul.f32 0.125, %s372_s9  ;;  %v334_v6 = vsel %vm332_vm14, %v333_v5, 0.0 }
 0x2e6   :  { %s331_s17 = smax.f32 %s330_s16, %s329_s13 }
 0x2e7   :  { %v336_v7 = vstv %s331_s17 }
 0x2e8   :  { %v337_v8 = vsel %vm335_vm15, %v336_v7, %v334_v6 }
 0x2e9   :  { %338 = vst [vmem:[#allocation8] sm:$0x1] %v337_v8 }
 0x2ea   :  { %349 = dma.vmem_to_hbm [thread:$0]  %s345_s15, 16, %s347_s12, [#allocation4]  }
 0x2eb   :  { %499 = dma.done.wait [#allocation4], 16  }
 0x2ec   :  { %500 = vsyncadd [#allocation4], 4294967280 }
 0x2ed   :  { %354 = vsyncpa [#allocation3], 1 }
 0x2ee   :  { %355 = vsyncpa [#allocation6], 1 }
 0x2ef   :  { %356 = vsyncpa [#allocation4], 1 }

</bundles_post_ra>
